<compile_context>
chip_gen: v7x
topology: tpu7x:2x2x1
jax: 0.10.0
libtpu: 0.0.40
codegen_flags: <defaults>
</compile_context>

<pallas_src>
import math
import functools

import jax
import jax.numpy as jnp
from jax import lax
from jax.experimental import pallas as pl
from jax.experimental.pallas import tpu as pltpu


def _embedding_gather_kernel(ids_ref, table_hbm, out_ref, sem, *,
                             block_tokens, n_inflight, scale):
    """One grid step: DMA-gather `block_tokens` embedding rows, then scale.

    ids_ref   : SMEM, (padded_tokens,) int32 token ids (scalar prefetch)
    table_hbm : HBM,  (vocab, d_model) embedding table (never enters VMEM whole)
    out_ref   : VMEM, (block_tokens, d_model) output tile
    sem       : DMA semaphores, (n_inflight,) sliding window
    """
    vocab = table_hbm.shape[0]
    base = pl.program_id(0) * block_tokens

    def issue(t, carry):
        # Read the address early (scalar read before any .wait()).
        tok = ids_ref[base + t]
        tok = jnp.clip(tok, 0, vocab - 1)          # OOB ids -> clamped (documented)
        slot = t & (n_inflight - 1)

        # Before reusing this slot, retire the copy issued n_inflight steps ago.
        @pl.when(t >= n_inflight)
        def _():
            pltpu.make_async_copy(
                table_hbm.at[0], out_ref.at[t - n_inflight], sem.at[slot]
            ).wait()

        pltpu.make_async_copy(
            table_hbm.at[tok], out_ref.at[t], sem.at[slot]
        ).start()
        return carry

    lax.fori_loop(0, block_tokens, issue, 0)

    # Drain the last min(n_inflight, block_tokens) outstanding row copies.
    n_drain = min(n_inflight, block_tokens)

    def drain(j, carry):
        t = block_tokens - n_drain + j
        slot = t & (n_inflight - 1)
        pltpu.make_async_copy(table_hbm.at[0], out_ref.at[t], sem.at[slot]).wait()
        return carry

    lax.fori_loop(0, n_drain, drain, 0)

    # Tile-wide scale on the VPU (f32 accumulate, cast back to table dtype).
    out_ref[...] = (out_ref[...].astype(jnp.float32) * scale).astype(out_ref.dtype)


def embedding_forward(x, table, *, block_tokens=256, max_inflight=16):
    """x: (batch, seq) integer token ids; table: (vocab, d_model).

    Returns (batch, seq, d_model) = table[x] * sqrt(d_model).
    """
    batch, seq = x.shape
    vocab, d_model = table.shape
    n_tokens = batch * seq

    # Token block: multiple of 8 sublanes, clamped to the problem size.
    bt = min(block_tokens, ((n_tokens + 7) // 8) * 8)
    bt = max(8, ((bt + 7) // 8) * 8)
    num_blocks = pl.cdiv(n_tokens, bt)
    padded_tokens = num_blocks * bt

    # Flatten + pad ids so every DMA in the (possibly partial) last block is
    # in-bounds; pad token 0 is always a valid row, its output rows are
    # dropped by Pallas as out-of-bounds writes.
    ids = x.reshape(n_tokens).astype(jnp.int32)
    if padded_tokens != n_tokens:
        ids = jnp.pad(ids, (0, padded_tokens - n_tokens))

    # 8 or 16 outstanding row DMAs (bt is a multiple of 8 -> power of two).
    n_inflight = min(max_inflight, bt)

    kernel = functools.partial(
        _embedding_gather_kernel,
        block_tokens=bt,
        n_inflight=n_inflight,
        scale=float(math.sqrt(d_model)),
    )

    # VMEM usage is just the double-buffered output tile + headroom.
    itemsize = jnp.dtype(table.dtype).itemsize
    out_tile_bytes = bt * d_model * itemsize
    vmem_limit = int(min(max(8 * out_tile_bytes, 8 << 20), 48 << 20))

    out_flat = pl.pallas_call(
        kernel,
        out_shape=jax.ShapeDtypeStruct((n_tokens, d_model), table.dtype),
        grid_spec=pltpu.PrefetchScalarGridSpec(
            num_scalar_prefetch=1,                  # ids -> SMEM
            grid=(num_blocks,),
            in_specs=[
                # Embedding table stays in HBM; rows are gathered manually.
                pl.BlockSpec(memory_space=pl.ANY),
            ],
            out_specs=pl.BlockSpec((bt, d_model), lambda i, ids: (i, 0)),
            scratch_shapes=[pltpu.SemaphoreType.DMA((n_inflight,))],
        ),
        compiler_params=pltpu.CompilerParams(
            # Disjoint output tiles -> token-block axis is embarrassingly
            # parallel (lets v7x shard across both TensorCores).
            dimension_semantics=("parallel",),
            vmem_limit_bytes=vmem_limit,
        ),
    )(ids, table)

    return out_flat.reshape(batch, seq, d_model)


if __name__ == "__main__":
    d_model = 32
    vocab_size = 64
    batch, seq = 2, 8

    key = jax.random.PRNGKey(0)
    k_table, k_ids = jax.random.split(key)

    # nn.Embedding default init: weights ~ N(0, 1)
    table = jax.random.normal(k_table, (vocab_size, d_model), dtype=jnp.float32)
    x = jax.random.randint(k_ids, (batch, seq), 0, vocab_size, dtype=jnp.int32)

    out = embedding_forward(x, table)
    out = jax.block_until_ready(out)

    # reference check
    ref = table[x] * jnp.float32(math.sqrt(d_model))
    assert out.shape == (batch, seq, d_model)
    assert jnp.allclose(out, ref, atol=1e-5, rtol=1e-5), float(
        jnp.max(jnp.abs(out - ref))
    )

    print("KERNEL_OK")
</pallas_src>

<mosaic_0001>
module attributes {stable_mosaic.version = 11 : i64} {
  func.func @_embedding_gather_kernel(%arg0: i32, %arg1: memref<16xi32, #tpu.memory_space<smem>>, %arg2: memref<64x32xf32, #tpu.memory_space<any>>, %arg3: memref<16x32xf32, #tpu.memory_space<vmem>>, %arg4: memref<16x!tpu.dma_semaphore, #tpu.memory_space<semaphore_mem>>) attributes {dimension_semantics = [#tpu.dimension_semantics<parallel>], iteration_bounds = array<i64: 1>, scalar_prefetch = 1 : i64, scratch_operands = 1 : i64, tpu.core_type = #tpu.core_type<tc>, window_params = [{}, {transform_indices = @transform_1, window_bounds = array<i64: 16, 32>}]} {
    %c16_i32 = arith.constant 16 : i32
    %0 = arith.muli %arg0, %c16_i32 : i32
    %c0_i32 = arith.constant 0 : i32
    %c16_i32_0 = arith.constant 16 : i32
    %1 = arith.addi %c0_i32, %c16_i32_0 : i32
    %c1_i32 = arith.constant 1 : i32
    scf.for %arg5 = %c0_i32 to %1 step %c1_i32  : i32 {
      %7 = arith.addi %0, %arg5 : i32
      %8 = arith.index_cast %7 : i32 to index
      %9 = memref.load %arg1[%8] : memref<16xi32, #tpu.memory_space<smem>>
      %c0_i32_9 = arith.constant 0 : i32
      %c63_i32 = arith.constant 63 : i32
      %10 = arith.maxsi %c0_i32_9, %9 : i32
      %11 = arith.minsi %c63_i32, %10 : i32
      %c15_i32 = arith.constant 15 : i32
      %12 = arith.andi %arg5, %c15_i32 : i32
      %c16_i32_10 = arith.constant 16 : i32
      %13 = arith.cmpi sge, %arg5, %c16_i32_10 : i32
      %14 = arith.extui %13 : i1 to i32
      %c0_i32_11 = arith.constant 0 : i32
      %15 = arith.cmpi ne, %14, %c0_i32_11 : i32
      scf.if %15 {
        %c16_i32_14 = arith.constant 16 : i32
        %22 = arith.subi %arg5, %c16_i32_14 : i32
        %c0_i32_15 = arith.constant 0 : i32
        %c0_i32_16 = arith.constant 0 : i32
        %23 = tpu.memref_slice %arg2[%c0_i32_15, %c0_i32_16] : memref<64x32xf32, #tpu.memory_space<any>> -> memref<1x32xf32, #tpu.memory_space<any>>
        %24 = tpu.memref_squeeze %23 : memref<1x32xf32, #tpu.memory_space<any>> -> memref<32xf32, #tpu.memory_space<any>>
        %c0_i32_17 = arith.constant 0 : i32
        %25 = tpu.memref_slice %arg3[%22, %c0_i32_17] : memref<16x32xf32, #tpu.memory_space<vmem>> -> memref<1x32xf32, #tpu.memory_space<vmem>>
        %26 = tpu.memref_squeeze %25 : memref<1x32xf32, #tpu.memory_space<vmem>> -> memref<32xf32, #tpu.memory_space<vmem>>
        %27 = tpu.memref_slice %arg4[%12] : memref<16x!tpu.dma_semaphore, #tpu.memory_space<semaphore_mem>> -> memref<1x!tpu.dma_semaphore, #tpu.memory_space<semaphore_mem>>
        %28 = tpu.memref_squeeze %27 : memref<1x!tpu.dma_semaphore, #tpu.memory_space<semaphore_mem>> -> memref<!tpu.dma_semaphore, #tpu.memory_space<semaphore_mem>>
        tpu.wait_dma2 semaphore(%28 : memref<!tpu.dma_semaphore, #tpu.memory_space<semaphore_mem>>) src(%24 : memref<32xf32, #tpu.memory_space<any>>) dst(%26 : memref<32xf32, #tpu.memory_space<vmem>>)
      } else {
      }
      %c0_i32_12 = arith.constant 0 : i32
      %16 = tpu.memref_slice %arg2[%11, %c0_i32_12] : memref<64x32xf32, #tpu.memory_space<any>> -> memref<1x32xf32, #tpu.memory_space<any>>
      %17 = tpu.memref_squeeze %16 : memref<1x32xf32, #tpu.memory_space<any>> -> memref<32xf32, #tpu.memory_space<any>>
      %c0_i32_13 = arith.constant 0 : i32
      %18 = tpu.memref_slice %arg3[%arg5, %c0_i32_13] : memref<16x32xf32, #tpu.memory_space<vmem>> -> memref<1x32xf32, #tpu.memory_space<vmem>>
      %19 = tpu.memref_squeeze %18 : memref<1x32xf32, #tpu.memory_space<vmem>> -> memref<32xf32, #tpu.memory_space<vmem>>
      %20 = tpu.memref_slice %arg4[%12] : memref<16x!tpu.dma_semaphore, #tpu.memory_space<semaphore_mem>> -> memref<1x!tpu.dma_semaphore, #tpu.memory_space<semaphore_mem>>
      %21 = tpu.memref_squeeze %20 : memref<1x!tpu.dma_semaphore, #tpu.memory_space<semaphore_mem>> -> memref<!tpu.dma_semaphore, #tpu.memory_space<semaphore_mem>>
      tpu.enqueue_dma source(%17 : memref<32xf32, #tpu.memory_space<any>>) target(%19 : memref<32xf32, #tpu.memory_space<vmem>>) target_semaphore(%21 : memref<!tpu.dma_semaphore, #tpu.memory_space<semaphore_mem>>)
    }
    %c16_i32_1 = arith.constant 16 : i32
    %c0_i32_2 = arith.constant 0 : i32
    %c16_i32_3 = arith.constant 16 : i32
    %2 = arith.addi %c0_i32_2, %c16_i32_3 : i32
    %c1_i32_4 = arith.constant 1 : i32
    scf.for %arg5 = %c0_i32_2 to %2 step %c1_i32_4  : i32 {
      %c0_i32_9 = arith.constant 0 : i32
      %7 = arith.addi %c0_i32_9, %arg5 : i32
      %c15_i32 = arith.constant 15 : i32
      %8 = arith.andi %7, %c15_i32 : i32
      %c0_i32_10 = arith.constant 0 : i32
      %c0_i32_11 = arith.constant 0 : i32
      %9 = tpu.memref_slice %arg2[%c0_i32_10, %c0_i32_11] : memref<64x32xf32, #tpu.memory_space<any>> -> memref<1x32xf32, #tpu.memory_space<any>>
      %10 = tpu.memref_squeeze %9 : memref<1x32xf32, #tpu.memory_space<any>> -> memref<32xf32, #tpu.memory_space<any>>
      %c0_i32_12 = arith.constant 0 : i32
      %11 = tpu.memref_slice %arg3[%7, %c0_i32_12] : memref<16x32xf32, #tpu.memory_space<vmem>> -> memref<1x32xf32, #tpu.memory_space<vmem>>
      %12 = tpu.memref_squeeze %11 : memref<1x32xf32, #tpu.memory_space<vmem>> -> memref<32xf32, #tpu.memory_space<vmem>>
      %13 = tpu.memref_slice %arg4[%8] : memref<16x!tpu.dma_semaphore, #tpu.memory_space<semaphore_mem>> -> memref<1x!tpu.dma_semaphore, #tpu.memory_space<semaphore_mem>>
      %14 = tpu.memref_squeeze %13 : memref<1x!tpu.dma_semaphore, #tpu.memory_space<semaphore_mem>> -> memref<!tpu.dma_semaphore, #tpu.memory_space<semaphore_mem>>
      tpu.wait_dma2 semaphore(%14 : memref<!tpu.dma_semaphore, #tpu.memory_space<semaphore_mem>>) src(%10 : memref<32xf32, #tpu.memory_space<any>>) dst(%12 : memref<32xf32, #tpu.memory_space<vmem>>)
    }
    %c16_i32_5 = arith.constant 16 : i32
    %c0 = arith.constant 0 : index
    %c0_6 = arith.constant 0 : index
    %3 = vector.load %arg3[%c0, %c0_6] : memref<16x32xf32, #tpu.memory_space<vmem>>, vector<16x32xf32>
    %cst = arith.constant 5.65685415 : f32
    %4 = vector.broadcast %cst : f32 to vector<16x32xf32>
    %5 = arith.mulf %3, %4 : vector<16x32xf32>
    %c0_7 = arith.constant 0 : index
    %c0_8 = arith.constant 0 : index
    %6 = vector.load %arg3[%c0_7, %c0_8] : memref<16x32xf32, #tpu.memory_space<vmem>>, vector<16x32xf32>
    tpu.vector_store %arg3[%c0_7, %c0_8], %5 {strides = array<i32>} : memref<16x32xf32, #tpu.memory_space<vmem>>, vector<16x32xf32>,
    return
  }
  func.func @transform_1(%arg0: i32, %arg1: memref<16xi32, #tpu.memory_space<smem>>) -> (i32, i32) {
    %c0_i32 = arith.constant 0 : i32
    %c0_i32_0 = arith.constant 0 : i32
    return %arg0, %c0_i32 : i32, i32
  }
}

</mosaic_0001>

<bundles_post_ra>
// kernel: tpu_custom_call.1
= control target key start
LH: loop header
LB: loop body
LE: loop exit
PB: predicated region body
PF: predicated region fallthrough
CT: control target
= control target key end

     0   :  { %s395_s0 = inlined_call_operand.vmem [shape: s32[16], index: 0, kind: input, shape index: {}]   ;;  %s396_s1 = inlined_call_operand.vmem [shape: f32[64,32], index: 1, kind: input, shape index: {}]   ;;  %s397_s2 = inlined_call_operand.hbm [shape: f32[16,32], index: 2, kind: output, shape index: {}]  }
   0x1   :  { %s7_s11 = sshll.u32 %s395_s0, 4  ;;  %s8_s11 = int_to_ptr.vmem [resolvable:$true] %s7_s11 }
   0x2   :  { %s298_s12 = scalar_lea.vmem %s8_s11, 16  ;;  %p303_p1 = scmp.lt.s32.totalorder %s8_s11, %s8_s11 }
   0x3   :  { %p299_p0 = scmp.ne.s32.totalorder %s8_s11, %s298_s12  ;;  %p304_p2 = scmp.lt.s32.totalorder %s298_s12, %s298_s12 }
   0x5   :  { %p305_p3 = por %p304_p2, %p303_p1 }
   0x7   :  { %p306_p4 = pnand %p305_p3, %p299_p0 }
   0x9   :  { %309 = shalt.err (!%p306_p4)  }
   0xa   :  { %s358_s13 = smov [#allocation4]  }
   0xb   :  { %10 = dma.vmem_to_smem %s8_s11, 16, %s358_s13, [#allocation3] }
   0xc   :  { %340 = dma.done.wait [#allocation3], 16 }
   0xd   :  { %341 = vsyncadd [#allocation3], 4294967280 }
   0xe   :  { %12 = sfence }
   0xf   :  { %13 = vsyncpa [#allocation6], 0  ;;  %s350_s14 = smov 0  }
  0x10 LB: > { %s22_s15 = sld [smem:[#allocation4 + %s352_s14]]  ;;  %s27_s0 = sand.u32 15, %s352_s14  ;;  %s352_s14 = sphi %s350_s14, %s20_s14  }
  0x11   : > { %p277_p5 = scmp.ge.s32.totalorder %s352_s14, 16  ;;  %s32_s16 = scalar_lea.sflag [#allocation2], %s27_s0 }
  0x16   : > { %p23_p6 = scmp.gt.s32.totalorder %s22_s15, 0  ;;  %p251_p7 = scmp.lt.s32.totalorder %s22_s15, 63 }
  0x18   : > { %s399_s15 = smov (!%p23_p6, %s22_s15), 0 }
  0x19   : > { %s401_s15 = smov (!%p251_p7, %s399_s15), 63 }
  0x1a   : > { %343 = dma.done.wait (%p277_p5), %s32_s16, 16 }
  0x1b   : > { %345 = vsyncadd (%p277_p5), %s32_s16, 4294967280  ;;  %s35_s19 = scalar_lea.vmem %s396_s1, %s401_s15  ;;  %s36_s20 = scalar_lea.vmem [#allocation5], %s352_s14 }
  0x1c   : > { %v55_v0 = vld [vmem:[%s35_s19] sm:$0x1] }
  0x1d   : > { %56 = vst [vmem:[%s36_s20] sm:$0x1] %v55_v0 }
  0x1e   : > { %81 = vsyncadd %s32_s16, 16  ;;  %s20_s14 = sadd.s32 1, %s352_s14  }
  0x1f   : > { %p17_p8 = scmp.ge.s32.totalorder %s20_s14, 16  }
  0x20   :  { %s354_s21 = smov (%p17_p8), 0  }
  0x21   :  { %19 = sbr.rel (!%p17_p8) target bundleno = 16 (0x10), region = 98 }
  0x28 LB: > { %s88_s22 = sand.u32 15, %s356_s21  ;;  %s356_s21 = sphi %s354_s21, %s87_s21  }
  0x29   : > { %s89_s23 = scalar_lea.sflag [#allocation2], %s88_s22 }
  0x2a   : > { %346 = dma.done.wait %s89_s23, 16 }
  0x2b   : > { %347 = vsyncadd %s89_s23, 4294967280  ;;  %s87_s21 = sadd.s32 1, %s356_s21  }
  0x2c   : > { %p84_p9 = scmp.ge.s32.totalorder %s87_s21, 16  }
  0x2d   :  { %v92_v1 = vld [vmem:[#allocation5] sm:$0xff] (%p84_p9)  ;;  %vm96_vm0 = vcmask (%p84_p9), 261120   ;;  %v93_v2 = vld [vmem:[#allocation5 + $0x8] sm:$0xff] (%p84_p9)  ;;  %s359_s24 = smov (%p84_p9), [#allocation5]  }
  0x2e   :  { %86 = sbr.rel (!%p84_p9) target bundleno = 40 (0x28), region = 109  ;;  %v94_v3 = vmul.f32 (%p84_p9), 5.656854, %v92_v1  ;;  %v95_v4 = vmul.f32 (%p84_p9), 5.656854, %v93_v2  ;;  %s104_s25 = sshll.u32 (%p84_p9), %s359_s24, 4  ;;  %s105_s25 = int_to_ptr.vmem [resolvable:$true] %s104_s25 }
  0x2f   :  { %s310_s1 = scalar_lea.vmem (%p84_p9), %s105_s25, 256  ;;  %p315_p11 = scmp.lt.s32.totalorder (%p84_p9), %s105_s25, %s105_s25 }
  0x30   :  { %97 = vst.msk [vmem:[#allocation5] sm:$0xff] (%p84_p9), %vm96_vm0, %v94_v3  ;;  %98 = vst.msk [vmem:[#allocation5 + $0x8] sm:$0xff] (%p84_p9), %vm96_vm0, %v95_v4  ;;  %p311_p10 = scmp.ne.s32.totalorder (%p84_p9), %s105_s25, %s310_s1  ;;  %p316_p12 = scmp.lt.s32.totalorder (%p84_p9), %s310_s1, %s310_s1 }
  0x32   :  { %p317_p13 = por (%p84_p9), %p316_p12, %p315_p11 }
  0x34   :  { %p318_p0 = pnand (%p84_p9), %p317_p13, %p311_p10 }
  0x36   :  { %321 = shalt.err (!%p318_p0)
}
  0x37   :  { %s322_s28 = scalar_lea.hbm %s397_s2, 256 }
  0x38   :  { %p323_p1 = scmp.ne.s32.totalorder %s397_s2, %s322_s28  ;;  %p326_p2 = scmp.lt.u32.totalorder %s322_s28, %s397_s2 }
  0x3a   :  { %p328_p3 = pnand %p326_p2, %p323_p1 }
  0x3c   :  { %331 = shalt.err (!%p328_p3)
}
  0x3d   :  { %s360_s5 = smov 128   ;;  %s361_s6 = smov 8  }
  0x3e   :  { %110 = dma.vmem_to_hbm [thread:$0]  %s105_s25, 256, %s397_s2, [#allocation6], %s360_s5, %s360_s5, %s361_s6  }
  0x3f   :  { %348 = dma.done.wait [#allocation6], 256  }
  0x40   :  { %349 = vsyncadd [#allocation6], 4294967040 }
  0x41   :  { %114 = vsyncpa [#allocation6], 1 }
  0x42   :  { %115 = vsyncmov [#allocation2] }
  0x45   :  { %s116_s9 = vpop.sfrf %115 }
  0x46   :  { %p257_p4 = scmp.ne.s32.totalorder %s116_s9, 0 }
  0x48   :  { %120 = shalt.err (%p257_p4)  }
  0x49   :  { %122 = vsyncmov [#allocation2 + $0x1] }
  0x4c   :  { %s123_s10 = vpop.sfrf %122 }
  0x4d   :  { %p258_p5 = scmp.ne.s32.totalorder %s123_s10, 0 }
  0x4f   :  { %127 = shalt.err (%p258_p5)  }
  0x50   :  { %129 = vsyncmov [#allocation2 + $0x2] }
  0x53   :  { %s130_s11 = vpop.sfrf %129 }
  0x54   :  { %p259_p6 = scmp.ne.s32.totalorder %s130_s11, 0 }
  0x56   :  { %134 = shalt.err (%p259_p6)  }
  0x57   :  { %136 = vsyncmov [#allocation2 + $0x3] }
  0x5a   :  { %s137_s12 = vpop.sfrf %136 }
  0x5b   :  { %p260_p7 = scmp.ne.s32.totalorder %s137_s12, 0 }
  0x5d   :  { %141 = shalt.err (%p260_p7)  }
  0x5e   :  { %143 = vsyncmov [#allocation2 + $0x4] }
  0x61   :  { %s144_s2 = vpop.sfrf %143 }
  0x62   :  { %p261_p8 = scmp.ne.s32.totalorder %s144_s2, 0 }
  0x64   :  { %148 = shalt.err (%p261_p8)  }
  0x65   :  { %150 = vsyncmov [#allocation2 + $0x5] }
  0x68   :  { %s151_s13 = vpop.sfrf %150 }
  0x69   :  { %p262_p9 = scmp.ne.s32.totalorder %s151_s13, 0 }
  0x6b   :  { %155 = shalt.err (%p262_p9)  }
  0x6c   :  { %157 = vsyncmov [#allocation2 + $0x6] }
  0x6f   :  { %s158_s14 = vpop.sfrf %157 }
  0x70   :  { %p263_p10 = scmp.ne.s32.totalorder %s158_s14, 0 }
  0x72   :  { %162 = shalt.err (%p263_p10)  }
  0x73   :  { %164 = vsyncmov [#allocation2 + $0x7] }
  0x76   :  { %s165_s15 = vpop.sfrf %164 }
  0x77   :  { %p264_p11 = scmp.ne.s32.totalorder %s165_s15, 0 }
  0x79   :  { %169 = shalt.err (%p264_p11)  }
  0x7a   :  { %171 = vsyncmov [#allocation2 + $0x8] }
  0x7d   :  { %s172_s0 = vpop.sfrf %171 }
  0x7e   :  { %p265_p12 = scmp.ne.s32.totalorder %s172_s0, 0 }
  0x80   :  { %176 = shalt.err (%p265_p12)  }
  0x81   :  { %178 = vsyncmov [#allocation2 + $0x9] }
  0x84   :  { %s179_s16 = vpop.sfrf %178 }
  0x85   :  { %p266_p13 = scmp.ne.s32.totalorder %s179_s16, 0 }
  0x87   :  { %183 = shalt.err (%p266_p13)  }
  0x88   :  { %185 = vsyncmov [#allocation2 + $0xa] }
  0x8b   :  { %s186_s17 = vpop.sfrf %185 }
  0x8c   :  { %p267_p0 = scmp.ne.s32.totalorder %s186_s17, 0 }
  0x8e   :  { %190 = shalt.err (%p267_p0)  }
  0x8f   :  { %192 = vsyncmov [#allocation2 + $0xb] }
  0x92   :  { %s193_s18 = vpop.sfrf %192 }
  0x93   :  { %p268_p1 = scmp.ne.s32.totalorder %s193_s18, 0 }
  0x95   :  { %197 = shalt.err (%p268_p1)  }
  0x96   :  { %199 = vsyncmov [#allocation2 + $0xc] }
  0x99   :  { %s200_s19 = vpop.sfrf %199 }
  0x9a   :  { %p269_p2 = scmp.ne.s32.totalorder %s200_s19, 0 }
  0x9c   :  { %204 = shalt.err (%p269_p2)  }
  0x9d   :  { %206 = vsyncmov [#allocation2 + $0xd] }
  0xa0   :  { %s207_s20 = vpop.sfrf %206 }
  0xa1   :  { %p270_p3 = scmp.ne.s32.totalorder %s207_s20, 0 }
  0xa3   :  { %211 = shalt.err (%p270_p3)  }
  0xa4   :  { %213 = vsyncmov [#allocation2 + $0xe] }
  0xa7   :  { %s214_s21 = vpop.sfrf %213 }
  0xa8   :  { %p271_p4 = scmp.ne.s32.totalorder %s214_s21, 0 }
  0xaa   :  { %218 = shalt.err (%p271_p4)  }
  0xab   :  { %220 = vsyncmov [#allocation2 + $0xf] }
  0xae   :  { %s221_s22 = vpop.sfrf %220 }
  0xaf   :  { %p272_p5 = scmp.ne.s32.totalorder %s221_s22, 0 }
  0xb1   :  { %225 = shalt.err (%p272_p5)  }

</bundles_post_ra>
